<compile_context>
chip_gen: v6e
topology: v6e:2x2x1
jax: 0.10.0
libtpu: 0.0.40
codegen_flags: <defaults>
</compile_context>

<pallas_src>
import jax
import jax.numpy as jnp
from jax.experimental import pallas as pl
from jax.experimental.pallas import tpu as pltpu


def _round_up(x, m):
    return (x + m - 1) // m * m


def _convbn_relu_kernel_single_k(p_ref, w_ref, o_ref):
    # p_ref: (TM, Kp) im2col patches (+ ones column), w_ref: (Kp, TN) BN-folded
    # weights (+ shift row). One MXU matmul, f32 accumulate, ReLU epilogue.
    acc = jnp.dot(p_ref[...], w_ref[...], preferred_element_type=jnp.float32)
    o_ref[...] = jnp.maximum(acc, 0.0).astype(o_ref.dtype)


def _convbn_relu_kernel_tiled_k(p_ref, w_ref, o_ref, acc_ref):
    # Same GEMM with the contraction tiled along an innermost "arbitrary" axis.
    k = pl.program_id(2)

    @pl.when(k == 0)
    def _():
        acc_ref[...] = jnp.zeros_like(acc_ref)

    acc_ref[...] += jnp.dot(p_ref[...], w_ref[...],
                            preferred_element_type=jnp.float32)

    @pl.when(k == pl.num_programs(2) - 1)
    def _():
        o_ref[...] = jnp.maximum(acc_ref[...], 0.0).astype(o_ref.dtype)


def basic_conv_pallas(x_nchw, w_oihw, gamma, beta, running_mean, running_var,
                      eps=1e-5, *, stride=1, padding=0,
                      compute_dtype=jnp.bfloat16, out_dtype=jnp.float32,
                      channels_last_out=False):
    """BasicConv forward: conv2d(bias=False) + BatchNorm(eval) + ReLU.

    x_nchw: (N, Cin, H, W), w_oihw: (Cout, Cin, KH, KW).
    Returns (N, Cout, Ho, Wo) (or NHWC if channels_last_out=True).
    """
    # TODO(synk): BatchNorm is fused in inference mode (running stats); the
    # training-mode batch-statistics update is not implemented in the kernel.
    N, Cin, H, W = x_nchw.shape
    Cout, _, KH, KW = w_oihw.shape
    Ho = (H + 2 * padding - KH) // stride + 1
    Wo = (W + 2 * padding - KW) // stride + 1
    K = KH * KW * Cin
    M = N * Ho * Wo
    K1 = K + 1                      # +1: "ones" column carrying the BN shift
    compute_bytes = jnp.dtype(compute_dtype).itemsize
    k_pack = 16 if compute_bytes == 2 else 8

    # ---- tile selection ----------------------------------------------------
    MAX_SINGLE_K = 2048
    if K1 <= MAX_SINGLE_K:
        Kp = _round_up(K1, k_pack)   # block spans full K dim -> no 128 pad needed
        tile_k = Kp
        num_k = 1
    else:
        tile_k = 2048
        Kp = _round_up(K1, tile_k)
        num_k = Kp // tile_k

    Cp = _round_up(Cout, 128)
    # Keep the whole (BN-folded) weight resident when small: single N block with
    # a constant index map -> DMA'd once for the whole grid.
    if tile_k * Cp * compute_bytes <= 4 * 1024 * 1024 and Cp <= 2048:
        tile_n = Cp
    else:
        tile_n = 256
        Cp = _round_up(Cout, tile_n)

    tile_m = min(512, _round_up(M, 128))
    Mp = _round_up(M, tile_m)
    # v7x has 2 TensorCores: keep >=2 blocks on a parallel axis when possible.
    if Mp // tile_m < 2 and Cp // tile_n < 2 and tile_m >= 256 and M > 128:
        tile_m = max(128, tile_m // 2)
        Mp = _round_up(M, tile_m)

    # ---- fold BatchNorm (inference) into weight scale + shift row -----------
    scale = gamma / jnp.sqrt(running_var + eps)            # (Cout,)
    shift = beta - running_mean * scale                    # (Cout,)

    # Weight: OIHW -> (KH, KW, Cin, Cout) -> (K, Cout), BN scale folded in,
    # BN shift appended as an extra K row (matched by the ones column below).
    w2 = jnp.transpose(w_oihw, (2, 3, 1, 0)).reshape(K, Cout) * scale[None, :]
    w2 = jnp.concatenate([w2, shift[None, :]], axis=0)     # (K+1, Cout)
    w2 = jnp.pad(w2, ((0, Kp - K1), (0, Cp - Cout))).astype(compute_dtype)

    # ---- im2col (wrapper side), already in compute dtype --------------------
    # TODO(synk): for very large Cin, move the KH*KW taps into the kernel
    # (NHWC pl.ANY ref + per-tap DMA) instead of materializing the patch matrix.
    x_nhwc = jnp.transpose(x_nchw, (0, 2, 3, 1)).astype(compute_dtype)
    if padding:
        x_nhwc = jnp.pad(
            x_nhwc, ((0, 0), (padding, padding), (padding, padding), (0, 0)))
    if KH == 1 and KW == 1 and stride == 1:
        patches = x_nhwc.reshape(M, K)
    else:
        patches = jnp.concatenate(
            [x_nhwc[:, kh:kh + (Ho - 1) * stride + 1:stride,
                    kw:kw + (Wo - 1) * stride + 1:stride, :]
             for kh in range(KH) for kw in range(KW)],
            axis=-1).reshape(M, K)
    ones_col = jnp.ones((M, 1), dtype=compute_dtype)
    patches = jnp.concatenate([patches, ones_col], axis=-1)     # (M, K+1)
    patches = jnp.pad(patches, ((0, Mp - M), (0, Kp - K1)))     # zero rows/cols exact

    # ---- pallas call ---------------------------------------------------------
    grid_mj = (Mp // tile_m, Cp // tile_n)
    compiler_params = pltpu.CompilerParams(
        dimension_semantics=("parallel", "parallel")
        + (("arbitrary",) if num_k > 1 else ()),
        vmem_limit_bytes=48 * 1024 * 1024)

    if num_k == 1:
        out = pl.pallas_call(
            _convbn_relu_kernel_single_k,
            out_shape=jax.ShapeDtypeStruct((Mp, Cp), out_dtype),
            grid_spec=pltpu.PrefetchScalarGridSpec(
                num_scalar_prefetch=0,
                grid=grid_mj,
                in_specs=[
                    pl.BlockSpec((tile_m, Kp), lambda i, j: (i, 0)),   # patches
                    pl.BlockSpec((Kp, tile_n), lambda i, j: (0, j)),   # weights
                ],
                out_specs=pl.BlockSpec((tile_m, tile_n), lambda i, j: (i, j)),
            ),
            compiler_params=compiler_params,
        )(patches, w2)
    else:
        out = pl.pallas_call(
            _convbn_relu_kernel_tiled_k,
            out_shape=jax.ShapeDtypeStruct((Mp, Cp), out_dtype),
            grid_spec=pltpu.PrefetchScalarGridSpec(
                num_scalar_prefetch=0,
                grid=grid_mj + (num_k,),
                in_specs=[
                    pl.BlockSpec((tile_m, tile_k), lambda i, j, k: (i, k)),
                    pl.BlockSpec((tile_k, tile_n), lambda i, j, k: (k, j)),
                ],
                out_specs=pl.BlockSpec((tile_m, tile_n), lambda i, j, k: (i, j)),
                scratch_shapes=[pltpu.VMEM((tile_m, tile_n), jnp.float32)],
            ),
            compiler_params=compiler_params,
        )(patches, w2)

    out = out[:M, :Cout].reshape(N, Ho, Wo, Cout)
    if channels_last_out:
        return out
    # TODO(synk): skip this NHWC->NCHW transpose (a full extra HBM pass) when
    # the consumer accepts channels-last activations.
    return jnp.transpose(out, (0, 3, 1, 2))


def _reference(x_nchw, w_oihw, gamma, beta, running_mean, running_var,
               eps=1e-5, stride=1, padding=0):
    y = jax.lax.conv_general_dilated(
        x_nchw, w_oihw, window_strides=(stride, stride),
        padding=[(padding, padding), (padding, padding)],
        dimension_numbers=("NCHW", "OIHW", "NCHW"))
    scale = (gamma / jnp.sqrt(running_var + eps)).reshape(1, -1, 1, 1)
    shift = (beta - running_mean * gamma / jnp.sqrt(running_var + eps)
             ).reshape(1, -1, 1, 1)
    return jnp.maximum(y * scale + shift, 0.0)


if __name__ == "__main__":
    # BasicConv(input_channels=4, output_channels=8, kernel_size=3) applied to
    # x of shape (2, 4, 16, 16).
    key = jax.random.PRNGKey(0)
    kx, kw, kg, kb, km, kv = jax.random.split(key, 6)

    N, Cin, H, W = 2, 4, 16, 16
    Cout, KH, KW = 8, 3, 3

    x = jax.random.normal(kx, (N, Cin, H, W), dtype=jnp.float32)
    w = jax.random.normal(kw, (Cout, Cin, KH, KW), dtype=jnp.float32) * 0.1
    gamma = 1.0 + 0.1 * jax.random.normal(kg, (Cout,), dtype=jnp.float32)
    beta = 0.1 * jax.random.normal(kb, (Cout,), dtype=jnp.float32)
    running_mean = 0.1 * jax.random.normal(km, (Cout,), dtype=jnp.float32)
    running_var = jnp.abs(jax.random.normal(kv, (Cout,), dtype=jnp.float32)) + 0.5

    # 1) Default bf16 compute path (f32 accumulation), stride=1 / no padding.
    out = basic_conv_pallas(x, w, gamma, beta, running_mean, running_var)
    out = jax.block_until_ready(out)
    ref = _reference(x, w, gamma, beta, running_mean, running_var)
    assert out.shape == (N, Cout, H - KH + 1, W - KW + 1)
    assert jnp.allclose(out, ref, atol=5e-2, rtol=5e-2), "bf16 path mismatch"

    # 2) f32 compute path (tight tolerance), exercising stride=2 / padding=1.
    out2 = basic_conv_pallas(x, w, gamma, beta, running_mean, running_var,
                             stride=2, padding=1, compute_dtype=jnp.float32)
    out2 = jax.block_until_ready(out2)
    ref2 = _reference(x, w, gamma, beta, running_mean, running_var,
                      stride=2, padding=1)
    assert out2.shape == ref2.shape
    assert jnp.allclose(out2, ref2, atol=1e-4, rtol=1e-4), "f32 strided mismatch"

    print("KERNEL_OK")
</pallas_src>

<mosaic_0001>
module attributes {stable_mosaic.version = 11 : i64} {
  func.func @_convbn_relu_kernel_single_k(%arg0: i32, %arg1: i32, %arg2: memref<256x48xbf16, #tpu.memory_space<vmem>>, %arg3: memref<48x128xbf16, #tpu.memory_space<vmem>>, %arg4: memref<256x128xf32, #tpu.memory_space<vmem>>) attributes {dimension_semantics = [#tpu.dimension_semantics<parallel>, #tpu.dimension_semantics<parallel>], iteration_bounds = array<i64: 2, 1>, scalar_prefetch = 0 : i64, scratch_operands = 0 : i64, tpu.core_type = #tpu.core_type<tc>, window_params = [{transform_indices = @transform_0, window_bounds = array<i64: 256, 48>}, {transform_indices = @transform_1, window_bounds = array<i64: 48, 128>}, {transform_indices = @transform_2, window_bounds = array<i64: 256, 128>}]} {
    %c0 = arith.constant 0 : index
    %c0_0 = arith.constant 0 : index
    %0 = vector.load %arg2[%c0, %c0_0] : memref<256x48xbf16, #tpu.memory_space<vmem>>, vector<256x48xbf16>
    %c0_1 = arith.constant 0 : index
    %c0_2 = arith.constant 0 : index
    %1 = vector.load %arg3[%c0_1, %c0_2] : memref<48x128xbf16, #tpu.memory_space<vmem>>, vector<48x128xbf16>
    %cst = arith.constant dense<0.000000e+00> : vector<256x128xf32>
    %2 = tpu.matmul %0, %1, %cst {dimension_numbers = #tpu.dot_dimension_numbers<[1], [0], [0], [1], [0, 0, 1, 1], [], []>} : vector<256x48xbf16>, vector<48x128xbf16>, vector<256x128xf32> -> vector<256x128xf32>
    %cst_3 = arith.constant 0.000000e+00 : f32
    %3 = vector.broadcast %cst_3 : f32 to vector<256x128xf32>
    %4 = arith.maximumf %2, %3 : vector<256x128xf32>
    %c0_4 = arith.constant 0 : index
    %c0_5 = arith.constant 0 : index
    %5 = vector.load %arg4[%c0_4, %c0_5] : memref<256x128xf32, #tpu.memory_space<vmem>>, vector<256x128xf32>
    tpu.vector_store %arg4[%c0_4, %c0_5], %4 {strides = array<i32>} : memref<256x128xf32, #tpu.memory_space<vmem>>, vector<256x128xf32>,
    return
  }
  func.func @transform_0(%arg0: i32, %arg1: i32) -> (i32, i32) {
    %c0_i32 = arith.constant 0 : i32
    %c0_i32_0 = arith.constant 0 : i32
    return %arg0, %c0_i32 : i32, i32
  }
  func.func @transform_1(%arg0: i32, %arg1: i32) -> (i32, i32) {
    %c0_i32 = arith.constant 0 : i32
    %c0_i32_0 = arith.constant 0 : i32
    return %c0_i32, %arg1 : i32, i32
  }
  func.func @transform_2(%arg0: i32, %arg1: i32) -> (i32, i32) {
    %c0_i32 = arith.constant 0 : i32
    return %arg0, %arg1 : i32, i32
  }
}

</mosaic_0001>

<bundles_post_ra>
// kernel: tpu_custom_call.1
= control target key start
LH: loop header
LB: loop body
LE: loop exit
PB: predicated region body
PF: predicated region fallthrough
CT: control target
= control target key end

     0   :  { %7 = vsyncpa [#allocation3], 0  ;;  %s1169_s0 = inlined_call_operand.vmem [shape: bf16[512,48], index: 0, kind: input, shape index: {}]   ;;  %s1170_s1 = inlined_call_operand.vmem [shape: bf16[48,128], index: 1, kind: input, shape index: {}]   ;;  %s1171_s2 = inlined_call_operand.hbm [shape: f32[512,128], index: 2, kind: output, shape index: {}]  }
   0x1   :  { %9 = vsyncpa [#allocation3 + $0x1], 0  ;;  %s974_s9 = smov 0   ;;  %s976_s10 = smov 0  }
   0x2   :  { %s978_s11 = smov 0   ;;  %s980_s12 = smov 0  }
   0x3   :  { %s982_s13 = smov 0   ;;  %s984_s14 = smov 0  }
   0x4 LB: > { %s689_s15 = sadd.s32 4294967295, %s954_s14   ;;  %s690_s16 = sadd.s32 4294967294, %s954_s14   ;;  %s954_s14 = sphi %s984_s14, %s15_s14   ;;  %s950_s13 = sphi %s982_s13, %s1178_s13   ;;  %s946_s12 = sphi %s980_s12, %s1177_s12   ;;  %s942_s11 = sphi %s978_s11, %s1176_s11   ;;  %s938_s10 = sphi %s976_s10, %s1175_s10   ;;  %s934_s9 = sphi %s974_s9, %s1174_s9  }
   0x5   : > { %s27_s17 = sadd.s32 1, %s950_s13  ;;  %s88_s18 = sadd.s32 1, %s942_s11 }
   0x6   : > { %p29_p0 = scmp.ge.s32.totalorder %s27_s17, 2  ;;  %p98_p1 = scmp.ne.s32.totalorder %s942_s11, %s938_s10 }
   0x7   : > { %p99_p2 = scmp.eq.s32.totalorder %s689_s15, 1  ;;  %p104_p3 = scmp.ne.s32.totalorder %s938_s10, %s934_s9 }
   0x8   : > { %s1180_s17 = smov (%p29_p0, %s27_s17), 0  ;;  %p105_p5 = scmp.eq.s32.totalorder %s690_s16, 1 }
   0x9   : > { %p1014_p4 = por %p99_p2, %p98_p1  ;;  %s83_s20 = ssub.s32 %s950_s13, %s1180_s17 }
   0xa   : > { %p694_p6 = scmp.ge.s32.totalorder %s954_s14, 1  ;;  %p86_p7 = scmp.eq.s32.totalorder %s83_s20, 0 }
   0xb   : > { %p1021_p8 = por %p105_p5, %p104_p3  ;;  %p139_p9 = scmp.lt.s32.totalorder %s954_s14, 3 }
   0xc   : > { %s1027_s22 = scalar_select %p86_p7, %s942_s11, %s88_s18  }
   0xd   : > { %p140_p10 = pnand %p694_p6, %p139_p9 }
   0xe   : > { %s696_s25 = sshll.u32 (!%p140_p10), %s946_s12, 5  ;;  %s162_s6 = sand.u32 (!%p140_p10), 1, %s938_s10  }
   0xf   : > { %143 = sbr.rel (%p140_p10) target bundleno = 272 (0x110), region = 28  ;;  %p166_p11 = scmp.lt.s32.totalorder (!%p140_p10), %s696_s25, 63 }
  0x10   : > { %s695_s7 = sshll.u32 (!%p140_p10), %s162_s6, 8  ;;  %s738_s15 = sshll.u32 (!%p140_p10), %s946_s12, 12 }
  0x11   : > { %s1079_s8 = scalar_lea.vmem (!%p140_p10), [#allocation2], %s695_s7  ;;  %s1114_s23 = scalar_lea.hbm (!%p140_p10), %s1171_s2, %s738_s15 }
  0x12   : > { %s602_s16 = sshll.u32 (!%p140_p10), %s1079_s8, 4  ;;  %s1124_s12 = scalar_lea.sflag (!%p140_p10), [#allocation3], %s162_s6  ;;  %s1116_s16 = int_to_ptr.vmem [resolvable:$true] %s602_s16 }
  0x13   : > { %s878_s24 = scalar_lea.vmem (!%p140_p10), %s1116_s16, 4096 }
  0x14   : > { %v859_v0 = vld [vmem:[%s1170_s1 + $0x10] sm:$0xff]   ;;  %v860_v1 = vld [vmem:[%s1170_s1 + $0x8] sm:$0xff]   ;;  %s1182_s25 = smov (!%p166_p11, %s696_s25), 63  ;;  %v861_v2 = vld [vmem:[%s1170_s1] sm:$0xff]   ;;  %vm313_vm0 = vcmask 392192   ;;  %p879_p12 = scmp.ne.s32.totalorder %s1116_s16, %s878_s24 }
  0x15   : > { %758 = vmatprep.subr.bf16.mxu0 %v859_v0  ;;  %796 = vmatprep.subr.bf16.mxu1 %v859_v0  ;;  %s697_s30 = sshll.u32 %s1182_s25, 2  ;;  %s956_s25 = smov [#allocation2]  }
  0x16   : > { %759 = vmatpush3.bf16.msra.mxu0 %v859_v0  ;;  %799 = vmatpush3.bf16.msra.mxu1 %v859_v0  ;;  %s1042_s5 = scalar_lea.vmem %s1169_s0, %s697_s30  ;;  %p880_p13 = pnand %p879_p12, %p1014_p4 }
  0x17   : > { %760 = vmatprep.subr.bf16.mxu0 %v860_v1  ;;  %797 = vmatprep.subr.bf16.mxu1 %v860_v1  ;;  %v862_v3 = vld [vmem:[%s1042_s5] sm:$0xff]   ;;  %v864_v5 = vld [vmem:[%s1042_s5 + $0x8] sm:$0xff]   ;;  %v866_v7 = vld [vmem:[%s1042_s5 + $0x10] sm:$0xff]   ;;  %s882_s26 = sshll.u32 %s956_s25, 4  ;;  %s883_s26 = int_to_ptr.vmem [resolvable:$false] %s882_s26 }
  0x18   : > { %v863_v4 = vld [vmem:[%s1042_s5 + $0x40] sm:$0xff]   ;;  %764 = vmatprep.mubr.msk.bf16.mxu0 %vm313_vm0, %v862_v3  ;;  %v865_v6 = vld [vmem:[%s1042_s5 + $0x48] sm:$0xff]   ;;  %v867_v8 = vld [vmem:[%s1042_s5 + $0x50] sm:$0xff]   ;;  %p881_p0 = pneg %p880_p13  ;;  %s884_s27 = scalar_lea.vmem %s883_s26, 8192 }
  0x19   : > { %780 = vmatprep.mubr.msk.bf16.mxu1 %vm313_vm0, %v863_v4  ;;  %v868_v9 = vld [vmem:[%s1042_s5 + $0x18] sm:$0xff]   ;;  %v870_v11 = vld [vmem:[%s1042_s5 + $0x20] sm:$0xff]   ;;  %v872_v13 = vld [vmem:[%s1042_s5 + $0x28] sm:$0xff]   ;;  %p885_p1 = scmp.lt.s32.totalorder %s1116_s16, %s883_s26  ;;  %p886_p2 = scmp.lt.s32.totalorder %s884_s27, %s878_s24 }
  0x1a   : > { %761 = vmatpush3.bf16.msra.mxu0 %v860_v1  ;;  %800 = vmatpush3.bf16.msra.mxu1 %v860_v1  ;;  %v869_v10 = vld [vmem:[%s1042_s5 + $0x58] sm:$0xff]   ;;  %v871_v12 = vld [vmem:[%s1042_s5 + $0x60] sm:$0xff]   ;;  %v873_v14 = vld [vmem:[%s1042_s5 + $0x68] sm:$0xff]  }
  0x1b   : > { %762 = vmatprep.subr.bf16.mxu0 %v861_v2  ;;  %798 = vmatprep.subr.bf16.mxu1 %v861_v2  ;;  %v874_v15 = vld [vmem:[%s1042_s5 + $0x30] sm:$0xff]   ;;  %v876_v17 = vld [vmem:[%s1042_s5 + $0x38] sm:$0xff]   ;;  %p887_p3 = por %p886_p2, %p885_p1 }
  0x1c   : > { %v875_v16 = vld [vmem:[%s1042_s5 + $0x70] sm:$0xff]   ;;  %v877_v18 = vld [vmem:[%s1042_s5 + $0x78] sm:$0xff]  }
  0x1d   : > { %p888_p5 = pnand %p887_p3, %p881_p0 }
  0x1e   : > { %763 = vmatpush3.bf16.msra.mxu0 %v861_v2  ;;  %801 = vmatpush3.bf16.msra.mxu1 %v861_v2 }
  0x21   : > { %765 = vmatmul.mubr.msk.bf16.vlgmr.msra.gmra.mxu0 %vm313_vm0, %v864_v5  ;;  %781 = vmatmul.mubr.msk.bf16.vlgmr.msra.gmra.mxu1 %vm313_vm0, %v865_v6 }
  0x22   : > { %768 = vmatprep.mubr.msk.bf16.mxu0 %vm313_vm0, %v866_v7  ;;  %784 = vmatprep.mubr.msk.bf16.mxu1 %vm313_vm0, %v867_v8 }
  0x29   : > { %769 = vmatmul.mubr.msk.bf16.gmra.mxu0 %vm313_vm0, %v868_v9  ;;  %785 = vmatmul.mubr.msk.bf16.gmra.mxu1 %vm313_vm0, %v869_v10 }
  0x2a   : > { %772 = vmatprep.mubr.msk.bf16.mxu0 %vm313_vm0, %v870_v11  ;;  %788 = vmatprep.mubr.msk.bf16.mxu1 %vm313_vm0, %v871_v12 }
  0x31   : > { %773 = vmatmul.mubr.msk.bf16.gmra.mxu0 %vm313_vm0, %v872_v13  ;;  %789 = vmatmul.mubr.msk.bf16.gmra.mxu1 %vm313_vm0, %v873_v14 }
  0x32   : > { %776 = vmatprep.mubr.msk.bf16.mxu0 %vm313_vm0, %v874_v15  ;;  %792 = vmatprep.mubr.msk.bf16.mxu1 %vm313_vm0, %v875_v16 }
  0x39   : > { %777 = vmatmul.mubr.msk.bf16.gmra.mxu0 %vm313_vm0, %v876_v17  ;;  %793 = vmatmul.mubr.msk.bf16.gmra.mxu1 %vm313_vm0, %v877_v18 }
  0xe1   : > { %v766_v19 = vpop.f32.mrf.mxu0  ;;  %v782_v20 = vpop.f32.mrf.mxu1 }
  0xe2   : > { %v525_v21 = vmax.f32 %v766_v19, 0.0  ;;  %v541_v22 = vmax.f32 %v782_v20, 0.0 }
  0xe3   : > { %v396_v23 = vpop.f32.mrf.mxu0  ;;  %v460_v24 = vpop.f32.mrf.mxu1 }
  0xe4   : > { %557 = vst [vmem:[%s1079_s8 + $0x10] sm:$0xff] %v525_v21  ;;  %573 = vst [vmem:[%s1079_s8 + $0x90] sm:$0xff] %v541_v22  ;;  %v523_v25 = vmax.f32 %v396_v23, 0.0  ;;  %v539_v26 = vmax.f32 %v460_v24, 0.0 }
  0xe5   : > { %v767_v27 = vpop.f32.mrf.mxu0  ;;  %v783_v28 = vpop.f32.mrf.mxu1 }
  0xe6   : > { %555 = vst [vmem:[%s1079_s8] sm:$0xff] %v523_v25  ;;  %571 = vst [vmem:[%s1079_s8 + $0x80] sm:$0xff] %v539_v26  ;;  %v526_v29 = vmax.f32 %v767_v27, 0.0  ;;  %v542_v30 = vmax.f32 %v783_v28, 0.0 }
  0xe7   : > { %v399_v31 = vpop.f32.mrf.mxu0  ;;  %v463_v32 = vpop.f32.mrf.mxu1 }
  0xe8   : > { %558 = vst [vmem:[%s1079_s8 + $0x18] sm:$0xff] %v526_v29  ;;  %574 = vst [vmem:[%s1079_s8 + $0x98] sm:$0xff] %v542_v30  ;;  %v524_v33 = vmax.f32 %v399_v31, 0.0  ;;  %v540_v34 = vmax.f32 %v463_v32, 0.0 }
  0xe9   : > { %v770_v35 = vpop.f32.mrf.mxu0  ;;  %v786_v36 = vpop.f32.mrf.mxu1 }
  0xea   : > { %556 = vst [vmem:[%s1079_s8 + $0x8] sm:$0xff] %v524_v33  ;;  %572 = vst [vmem:[%s1079_s8 + $0x88] sm:$0xff] %v540_v34  ;;  %v529_v37 = vmax.f32 %v770_v35, 0.0  ;;  %v545_v38 = vmax.f32 %v786_v36, 0.0 }
  0xeb   : > { %v412_v39 = vpop.f32.mrf.mxu0  ;;  %v476_v40 = vpop.f32.mrf.mxu1 }
  0xec   : > { %561 = vst [vmem:[%s1079_s8 + $0x30] sm:$0xff] %v529_v37  ;;  %577 = vst [vmem:[%s1079_s8 + $0xb0] sm:$0xff] %v545_v38  ;;  %v527_v41 = vmax.f32 %v412_v39, 0.0  ;;  %v543_v42 = vmax.f32 %v476_v40, 0.0 }
  0xed   : > { %v771_v43 = vpop.f32.mrf.mxu0  ;;  %v787_v44 = vpop.f32.mrf.mxu1 }
  0xee   : > { %559 = vst [vmem:[%s1079_s8 + $0x20] sm:$0xff] %v527_v41  ;;  %575 = vst [vmem:[%s1079_s8 + $0xa0] sm:$0xff] %v543_v42  ;;  %v530_v45 = vmax.f32 %v771_v43, 0.0  ;;  %v546_v46 = vmax.f32 %v787_v44, 0.0 }
  0xef   : > { %v415_v47 = vpop.f32.mrf.mxu0  ;;  %v479_v48 = vpop.f32.mrf.mxu1 }
  0xf0   : > { %562 = vst [vmem:[%s1079_s8 + $0x38] sm:$0xff] %v530_v45  ;;  %578 = vst [vmem:[%s1079_s8 + $0xb8] sm:$0xff] %v546_v46  ;;  %v528_v49 = vmax.f32 %v415_v47, 0.0  ;;  %v544_v50 = vmax.f32 %v479_v48, 0.0 }
  0xf1   : > { %v774_v51 = vpop.f32.mrf.mxu0  ;;  %v790_v52 = vpop.f32.mrf.mxu1 }
  0xf2   : > { %560 = vst [vmem:[%s1079_s8 + $0x28] sm:$0xff] %v528_v49  ;;  %576 = vst [vmem:[%s1079_s8 + $0xa8] sm:$0xff] %v544_v50  ;;  %v533_v53 = vmax.f32 %v774_v51, 0.0  ;;  %v549_v54 = vmax.f32 %v790_v52, 0.0 }
  0xf3   : > { %v428_v55 = vpop.f32.mrf.mxu0  ;;  %v492_v56 = vpop.f32.mrf.mxu1 }
  0xf4   : > { %565 = vst [vmem:[%s1079_s8 + $0x50] sm:$0xff] %v533_v53  ;;  %581 = vst [vmem:[%s1079_s8 + $0xd0] sm:$0xff] %v549_v54  ;;  %v531_v57 = vmax.f32 %v428_v55, 0.0  ;;  %v547_v58 = vmax.f32 %v492_v56, 0.0 }
  0xf5   : > { %v775_v59 = vpop.f32.mrf.mxu0  ;;  %v791_v60 = vpop.f32.mrf.mxu1 }
  0xf6   : > { %563 = vst [vmem:[%s1079_s8 + $0x40] sm:$0xff] %v531_v57  ;;  %579 = vst [vmem:[%s1079_s8 + $0xc0] sm:$0xff] %v547_v58  ;;  %v534_v61 = vmax.f32 %v775_v59, 0.0  ;;  %v550_v62 = vmax.f32 %v791_v60, 0.0 }
  0xf7   : > { %v431_v63 = vpop.f32.mrf.mxu0  ;;  %v495_v0 = vpop.f32.mrf.mxu1 }
  0xf8   : > { %566 = vst [vmem:[%s1079_s8 + $0x58] sm:$0xff] %v534_v61  ;;  %582 = vst [vmem:[%s1079_s8 + $0xd8] sm:$0xff] %v550_v62  ;;  %v532_v1 = vmax.f32 %v431_v63, 0.0  ;;  %v548_v2 = vmax.f32 %v495_v0, 0.0 }
  0xf9   : > { %v778_v3 = vpop.f32.mrf.mxu0  ;;  %v794_v4 = vpop.f32.mrf.mxu1 }
  0xfa   : > { %564 = vst [vmem:[%s1079_s8 + $0x48] sm:$0xff] %v532_v1  ;;  %580 = vst [vmem:[%s1079_s8 + $0xc8] sm:$0xff] %v548_v2  ;;  %v537_v5 = vmax.f32 %v778_v3, 0.0  ;;  %v553_v6 = vmax.f32 %v794_v4, 0.0 }
  0xfb   : > { %v444_v7 = vpop.f32.mrf.mxu0  ;;  %v508_v8 = vpop.f32.mrf.mxu1 }
  0xfc   : > { %569 = vst [vmem:[%s1079_s8 + $0x70] sm:$0xff] %v537_v5  ;;  %585 = vst [vmem:[%s1079_s8 + $0xf0] sm:$0xff] %v553_v6  ;;  %v535_v9 = vmax.f32 %v444_v7, 0.0  ;;  %v551_v10 = vmax.f32 %v508_v8, 0.0 }
  0xfd   : > { %v779_v11 = vpop.f32.mrf.mxu0  ;;  %v795_v12 = vpop.f32.mrf.mxu1 }
  0xfe   : > { %567 = vst [vmem:[%s1079_s8 + $0x60] sm:$0xff] %v535_v9  ;;  %583 = vst [vmem:[%s1079_s8 + $0xe0] sm:$0xff] %v551_v10  ;;  %v538_v13 = vmax.f32 %v779_v11, 0.0  ;;  %v554_v14 = vmax.f32 %v795_v12, 0.0 }
  0xff   : > { %v447_v15 = vpop.f32.mrf.mxu0  ;;  %v511_v16 = vpop.f32.mrf.mxu1 }
 0x100   : > { %570 = vst [vmem:[%s1079_s8 + $0x78] sm:$0xff] %v538_v13  ;;  %586 = vst [vmem:[%s1079_s8 + $0xf8] sm:$0xff] %v554_v14  ;;  %v536_v17 = vmax.f32 %v447_v15, 0.0  ;;  %v552_v18 = vmax.f32 %v511_v16, 0.0 }
 0x102   : > { %568 = vst [vmem:[%s1079_s8 + $0x68] sm:$0xff] %v536_v17  ;;  %584 = vst [vmem:[%s1079_s8 + $0xe8] sm:$0xff] %v552_v18 }
 0x103   : > { %891 = shalt.err (!%p888_p5)
}
 0x104   : > { %s892_s28 = scalar_lea.hbm %s1114_s23, 4096  ;;  %s896_s3 = scalar_lea.hbm %s1171_s2, 8192 }
 0x105   : > { %p893_p6 = scmp.ne.s32.totalorder %s1114_s23, %s892_s28  ;;  %p897_p10 = scmp.lt.s32.totalorder %s1114_s23, %s1171_s2 }
 0x106   : > { %p898_p11 = scmp.lt.s32.totalorder %s896_s3, %s892_s28 }
 0x107   : > { %p894_p7 = pnand %p893_p6, %p1014_p4 }
 0x108   : > { %p899_p12 = por %p898_p11, %p897_p10 }
 0x109   : > { %p895_p9 = pneg %p894_p7 }
 0x10b   : > { %p900_p13 = pnand %p899_p12, %p895_p9 }
 0x10d   : > { %903 = shalt.err (!%p900_p13)
}
 0x10e   : > { %s957_s6 = smov 128   ;;  %s958_s7 = smov 8  }
 0x10f   : > { %802 = dma.vmem_to_hbm [thread:$0]  (%p1014_p4), %s1116_s16, 4096, %s1114_s23, %s1124_s12, %s957_s6, %s957_s6, %s958_s7  }
 0x110 PF: > { %p808_p0 = scmp.ge.s32.totalorder %s954_s14, 2  ;;  %s617_s8 = sand.u32 1, %s934_s9  }
 0x111   : > { %s618_s15 = scalar_lea.sflag [#allocation3], %s617_s8 }
 0x112   : > { %p805_p1 = pnand %p808_p0, %p1021_p8 }
 0x114   : > { %p806_p2 = pneg %p805_p1 }
 0x116   : > { %929 = dma.done.wait (%p806_p2), %s618_s15, 4096  }
 0x117   : > { %931 = vsyncadd (%p806_p2), %s618_s15, 4294963200  ;;  %s15_s14 = sadd.s32 1, %s954_s14   ;;  %s1174_s9 = smov %s938_s10 }
 0x118   : > { %p12_p3 = scmp.ge.s32.totalorder %s15_s14, 4   ;;  %s1175_s10 = smov %s942_s11 }
 0x119   : > { %s1176_s11 = smov %s1027_s22  ;;  %s1177_s12 = smov %s950_s13 }
 0x11a   : > { %s1178_s13 = smov %s1180_s17  ;;  %14 = sbr.rel (!%p12_p3) target bundleno = 4 (0x4), region = 66 }
 0x11f   :  { %623 = vsyncpa [#allocation3], 1 }
 0x120   :  { %625 = vsyncpa [#allocation3 + $0x1], 1 }

</bundles_post_ra>
